<compile_context>
chip_gen: v7x
topology: tpu7x:2x2x1
jax: 0.10.0
libtpu: 0.0.40
codegen_flags: <defaults>
</compile_context>

<pallas_src>
import jax
import jax.numpy as jnp
from jax.experimental import pallas as pl
from jax.experimental.pallas import tpu as pltpu


def _locked_dropout_kernel(x_ref, m_ref, o_ref):
    # x_ref/o_ref: (t_tile, BH_pad) block; m_ref: (1, BH_pad), identical for
    # every grid step ("locked" over the sequence axis). Pure streaming
    # broadcast-multiply -> HBM-roofline bound.
    o_ref[...] = x_ref[...] * m_ref[...]


def _make_mask(key, dropout, bh, dtype):
    """The locked (1, B*H) mask, pre-scaled by 1/(1-p), in x.dtype."""
    keep = jax.random.bernoulli(key, 1.0 - float(dropout), (1, bh))
    scale = jnp.asarray(1.0 / (1.0 - float(dropout)), dtype)
    return jnp.where(keep, scale, jnp.asarray(0.0, dtype))


def locked_dropout(x, key, dropout=0.5, training=True, force_pallas=False):
    """LockedDropout forward. x: (T, B, H); the same mask is used for every t."""
    if (not training) or dropout == 0.0:
        return x

    T, B, H = x.shape
    BH = B * H
    dtype = x.dtype
    itemsize = jnp.dtype(dtype).itemsize

    mask = _make_mask(key, dropout, BH, dtype)
    x2 = x.reshape(T, BH)

    # Small-problem fast path: launch overhead would dominate; XLA fuses the
    # elementwise multiply for free.
    total_bytes = T * BH * itemsize
    if (not force_pallas) and total_bytes < (1 << 20):
        return (x2 * mask).reshape(T, B, H)

    # ---- lane padding: keep the trailing dim a multiple of 128 ----
    LANE = 128
    BH_pad = -(-BH // LANE) * LANE
    if BH_pad != BH:
        x2p = jnp.pad(x2, ((0, 0), (0, BH_pad - BH)))
        maskp = jnp.pad(mask, ((0, 0), (0, BH_pad - BH)))
    else:
        x2p, maskp = x2, mask

    # ---- pick the T tile ----
    sublane = max(8, 32 // itemsize)           # 8 for f32, 16 for bf16, 32 for int8
    row_bytes = BH_pad * itemsize
    target_block_bytes = 4 * 1024 * 1024       # ~4 MiB streaming blocks
    t_rows_max = max(sublane, (target_block_bytes // row_bytes) // sublane * sublane)
    t_rows_max = min(t_rows_max, T)

    num_blocks = -(-T // t_rows_max)
    # Guarantee >= 2 grid points when T allows, so v7x's second TensorCore
    # gets half of the stream (HBM bandwidth is per-core).
    if num_blocks < 2 and T >= 2 * sublane:
        num_blocks = 2
    t_tile = -(-T // num_blocks)               # balanced blocks, minimal ragged tail
    if t_tile < T:
        t_tile = -(-t_tile // sublane) * sublane
    t_tile = min(t_tile, T)
    grid = (-(-T // t_tile),)

    # ---- VMEM budget: 2 in + 2 out blocks + (double-buffered) mask + slack ----
    block_bytes = t_tile * row_bytes
    vmem_need = 4 * block_bytes + 2 * row_bytes + (2 << 20)
    vmem_limit = int(min(max(vmem_need, 16 << 20), 48 << 20))

    out2 = pl.pallas_call(
        _locked_dropout_kernel,
        out_shape=jax.ShapeDtypeStruct((T, BH_pad), dtype),
        grid=grid,
        in_specs=[
            pl.BlockSpec((t_tile, BH_pad), lambda t: (t, 0)),  # streaming x tiles
            pl.BlockSpec((1, BH_pad), lambda t: (0, 0)),       # VMEM-resident mask
        ],
        out_specs=pl.BlockSpec((t_tile, BH_pad), lambda t: (t, 0)),
        compiler_params=pltpu.CompilerParams(
            dimension_semantics=("parallel",),
            vmem_limit_bytes=vmem_limit,
        ),
        cost_estimate=pl.CostEstimate(
            flops=T * BH_pad,
            transcendentals=0,
            bytes_accessed=2 * T * BH_pad * itemsize + BH_pad * itemsize,
        ),
    )(x2p, maskp)

    if BH_pad != BH:
        out2 = out2[:, :BH]
    return out2.reshape(T, B, H)


if __name__ == "__main__":
    key = jax.random.PRNGKey(0)
    xkey, mkey, xkey2, mkey2 = jax.random.split(key, 4)
    dropout = 0.5

    # ---- small shape consistent with the module (seq=8, batch=4, hidden=32) ----
    T, B, H = 8, 4, 32
    x = jax.random.normal(xkey, (T, B, H), dtype=jnp.float32)

    out = locked_dropout(x, mkey, dropout=dropout, training=True, force_pallas=True)
    out = jax.block_until_ready(out)
    assert out.shape == x.shape and out.dtype == x.dtype

    # Exact pure-JAX reference (same deterministic mask construction).
    ref_mask = _make_mask(mkey, dropout, B * H, x.dtype)       # (1, B*H)
    expected = (x.reshape(T, B * H) * ref_mask).reshape(T, B, H)
    assert bool(jnp.allclose(out, expected, atol=1e-6)), "mismatch vs reference"

    # Mask is locked over T and its values are in {0, 1/(1-p)}.
    scale = 1.0 / (1.0 - dropout)
    mvals = ref_mask[0]
    assert bool(jnp.all(jnp.logical_or(mvals == 0.0,
                                       jnp.abs(mvals - scale) < 1e-5)))

    # ---- larger shape: exercises multi-block grid + 128-lane padding ----
    T2, B2, H2 = 2048, 4, 100   # B*H = 400 -> padded to 512 lanes
    x2 = jax.random.normal(xkey2, (T2, B2, H2), dtype=jnp.float32)
    out2 = jax.block_until_ready(
        locked_dropout(x2, mkey2, dropout=dropout, training=True))
    ref_mask2 = _make_mask(mkey2, dropout, B2 * H2, x2.dtype)
    expected2 = (x2.reshape(T2, B2 * H2) * ref_mask2).reshape(T2, B2, H2)
    assert bool(jnp.allclose(out2, expected2, atol=1e-6)), "mismatch (large case)"

    # Eval mode / dropout=0 passthrough.
    assert bool(jnp.all(locked_dropout(x, mkey, dropout=0.5, training=False) == x))
    assert bool(jnp.all(locked_dropout(x, mkey, dropout=0.0, training=True) == x))

    print("KERNEL_OK")
</pallas_src>

<mosaic_0001>
module attributes {stable_mosaic.version = 11 : i64} {
  func.func @_locked_dropout_kernel(%arg0: i32, %arg1: memref<8x128xf32, #tpu.memory_space<vmem>>, %arg2: memref<1x128xf32, #tpu.memory_space<vmem>>, %arg3: memref<8x128xf32, #tpu.memory_space<vmem>>) attributes {dimension_semantics = [#tpu.dimension_semantics<parallel>], iteration_bounds = array<i64: 1>, scalar_prefetch = 0 : i64, scratch_operands = 0 : i64, tpu.core_type = #tpu.core_type<tc>, window_params = [{transform_indices = @transform_0, window_bounds = array<i64: 8, 128>}, {pipeline_mode = #tpu.pipeline_mode<synchronous>, transform_indices = @transform_1, window_bounds = array<i64: 1, 128>}, {transform_indices = @transform_2, window_bounds = array<i64: 8, 128>}]} {
    %c0 = arith.constant 0 : index
    %c0_0 = arith.constant 0 : index
    %0 = vector.load %arg1[%c0, %c0_0] : memref<8x128xf32, #tpu.memory_space<vmem>>, vector<8x128xf32>
    %c0_1 = arith.constant 0 : index
    %c0_2 = arith.constant 0 : index
    %1 = vector.load %arg2[%c0_1, %c0_2] : memref<1x128xf32, #tpu.memory_space<vmem>>, vector<1x128xf32>
    %2 = vector.broadcast %1 : vector<1x128xf32> to vector<8x128xf32>
    %3 = arith.mulf %0, %2 : vector<8x128xf32>
    %c0_3 = arith.constant 0 : index
    %c0_4 = arith.constant 0 : index
    %4 = vector.load %arg3[%c0_3, %c0_4] : memref<8x128xf32, #tpu.memory_space<vmem>>, vector<8x128xf32>
    tpu.vector_store %arg3[%c0_3, %c0_4], %3 {strides = array<i32>} : memref<8x128xf32, #tpu.memory_space<vmem>>, vector<8x128xf32>,
    return
  }
  func.func @transform_0(%arg0: i32) -> (i32, i32) {
    %c0_i32 = arith.constant 0 : i32
    %c0_i32_0 = arith.constant 0 : i32
    return %arg0, %c0_i32 : i32, i32
  }
  func.func @transform_1(%arg0: i32) -> (i32, i32) {
    %c0_i32 = arith.constant 0 : i32
    %c0_i32_0 = arith.constant 0 : i32
    %c0_i32_1 = arith.constant 0 : i32
    return %c0_i32, %c0_i32_0 : i32, i32
  }
  func.func @transform_2(%arg0: i32) -> (i32, i32) {
    %c0_i32 = arith.constant 0 : i32
    %c0_i32_0 = arith.constant 0 : i32
    return %arg0, %c0_i32 : i32, i32
  }
}

</mosaic_0001>

<bundles_post_ra>
// kernel: tpu_custom_call.1
= control target key start
LH: loop header
LB: loop body
LE: loop exit
PB: predicated region body
PF: predicated region fallthrough
CT: control target
= control target key end

     0   :  { %7 = vsyncpa [#allocation3], 0  ;;  %s144_s0 = inlined_call_operand.hbm [shape: f32[8,128], index: 0, kind: input, shape index: {}]   ;;  %s145_s1 = inlined_call_operand.vmem [shape: f32[1,128], index: 1, kind: input, shape index: {}]   ;;  %s146_s2 = inlined_call_operand.hbm [shape: f32[8,128], index: 2, kind: output, shape index: {}]  }
   0x1   :  { %8 = vsyncpa [#allocation4], 0  ;;  %s100_s9 = smov [#allocation2]   ;;  %s52_s13 = scalar_lea.hbm %s144_s0, 128 }
   0x2   :  { %s15_s10 = sshll.u32 %s100_s9, 4  ;;  %p53_p0 = scmp.ne.s32.totalorder %s144_s0, %s52_s13  ;;  %s16_s10 = int_to_ptr.vmem [resolvable:$true] %s15_s10 }
   0x3   :  { %p56_p1 = scmp.lt.u32.totalorder %s52_s13, %s144_s0 }
   0x5   :  { %p58_p2 = pnand %p56_p1, %p53_p0 }
   0x7   :  { %61 = shalt.err (!%p58_p2)
}
   0x8   :  { %s62_s18 = scalar_lea.vmem %s16_s10, 128  ;;  %p67_p4 = scmp.lt.s32.totalorder %s16_s10, %s16_s10 }
   0x9   :  { %p63_p3 = scmp.ne.s32.totalorder %s16_s10, %s62_s18  ;;  %p68_p5 = scmp.lt.s32.totalorder %s62_s18, %s62_s18 }
   0xb   :  { %p69_p6 = por %p68_p5, %p67_p4 }
   0xd   :  { %p70_p7 = pnand %p69_p6, %p63_p3 }
   0xf   :  { %73 = shalt.err (!%p70_p7)
}
  0x10   :  { %18 = dma.hbm_to_vmem [thread:$0]  %s144_s0, 128, %s16_s10, [#allocation3]  }
  0x11   :  { %96 = dma.done.wait [#allocation3], 128  }
  0x12   :  { %97 = vsyncadd [#allocation3], 4294967168  ;;  %s101_s21 = smov [#allocation5]   ;;  %v24_v0 = vld [vmem:[#allocation2] sm:$0xff] }
  0x13   :  { %s40_s22 = sshll.u32 %s101_s21, 4  ;;  %v49_v1 = vld [vmem:[%s145_s1] ss:$0 sm:$0xff]  ;;  %s41_s22 = int_to_ptr.vmem [resolvable:$true] %s40_s22 }
  0x14   :  { %v32_v2 = vmul.f32 %v49_v1, %v24_v0  ;;  %s74_s25 = scalar_lea.vmem %s41_s22, 128  ;;  %p79_p9 = scmp.lt.s32.totalorder %s41_s22, %s41_s22 }
  0x15   :  { %p75_p8 = scmp.ne.s32.totalorder %s41_s22, %s74_s25  ;;  %p80_p10 = scmp.lt.s32.totalorder %s74_s25, %s74_s25 }
  0x16   :  { %33 = vst [vmem:[#allocation5] sm:$0xff] %v32_v2 }
  0x17   :  { %p81_p11 = por %p80_p10, %p79_p9 }
  0x19   :  { %p82_p12 = pnand %p81_p11, %p75_p8 }
  0x1b   :  { %85 = shalt.err (!%p82_p12)
}
  0x1c   :  { %s86_s27 = scalar_lea.hbm %s146_s2, 128 }
  0x1d   :  { %p87_p13 = scmp.ne.s32.totalorder %s146_s2, %s86_s27  ;;  %p90_p0 = scmp.lt.u32.totalorder %s86_s27, %s146_s2 }
  0x1f   :  { %p92_p1 = pnand %p90_p0, %p87_p13 }
  0x21   :  { %95 = shalt.err (!%p92_p1)
}
  0x22   :  { %43 = dma.vmem_to_hbm [thread:$0]  %s41_s22, 128, %s146_s2, [#allocation4]  }
  0x23   :  { %98 = dma.done.wait [#allocation4], 128  }
  0x24   :  { %99 = vsyncadd [#allocation4], 4294967168 }
  0x25   :  { %47 = vsyncpa [#allocation3], 1 }
  0x26   :  { %48 = vsyncpa [#allocation4], 1 }

</bundles_post_ra>
